<compile_context>
chip_gen: v6e
topology: v6e:2x2x1
jax: 0.10.0
libtpu: 0.0.40
codegen_flags: <defaults>
</compile_context>

<pallas_src>
import jax
import jax.numpy as jnp
from jax import lax
from jax.experimental import pallas as pl
from jax.experimental.pallas import tpu as pltpu
import numpy as np

V = 128    # vocabulary size; ids outside [0, V) are ignored entirely
           # (neither counted nor included in the lengths).
PAD = -1   # padding token id (< 0, so it is ignored like any out-of-vocab id)


def _counts_dtype(seq_len):
    """bf16 counting on bf16-native VPUs (v6e / v7x); int32 elsewhere."""
    if seq_len > 256:            # counts must stay exactly representable in bf16
        return jnp.int32
    try:
        kind = jax.devices()[0].device_kind.lower()
    except Exception:
        return jnp.int32
    if any(t in kind for t in ("v2", "v3", "v4", "v5")):
        return jnp.int32         # no bf16 VALU on these generations
    return jnp.bfloat16


def _make_rouge1_kernel(seq_len, compute_dtype):
    use_mxu_reduce = jnp.issubdtype(compute_dtype, jnp.floating)

    def kernel(refs_ref, hyps_ref, f1_ref):
        bt = refs_ref.shape[0]

        refs = refs_ref[...].astype(compute_dtype)                   # (BT, L)
        hyps = hyps_ref[...].astype(compute_dtype)                   # (BT, L)
        lane = lax.broadcasted_iota(jnp.int32, (bt, V), 1).astype(compute_dtype)

        # Unigram count planes, vocabulary on the lane axis.  In bf16 each
        # plane is half the vregs of int32, keeping the hot loop spill-free.
        ref_cnt = jnp.zeros((bt, V), compute_dtype)
        hyp_cnt = jnp.zeros((bt, V), compute_dtype)
        # Static unroll; fine for the short metric sequences this targets
        # (for L >> 64 switch to a chunked fori_loop to bound code size).
        for l in range(seq_len):
            ref_cnt = ref_cnt + (refs[:, l:l + 1] == lane).astype(compute_dtype)
            hyp_cnt = hyp_cnt + (hyps[:, l:l + 1] == lane).astype(compute_dtype)

        # Lane reductions.  Lengths come from the count planes, so PAD and
        # any id >= V are consistently excluded from both p and r.
        if use_mxu_reduce:
            # Kernel is VPU-bound -> push the reductions onto the idle MXU.
            ones_col = jnp.ones((V, 1), compute_dtype)
            overlap = jnp.dot(jnp.minimum(ref_cnt, hyp_cnt), ones_col,
                              preferred_element_type=jnp.float32)     # (BT,1)
            denom = (jnp.dot(ref_cnt, ones_col, preferred_element_type=jnp.float32)
                     + jnp.dot(hyp_cnt, ones_col, preferred_element_type=jnp.float32))
        else:
            overlap = jnp.sum(jnp.minimum(ref_cnt, hyp_cnt), axis=1,
                              keepdims=True).astype(jnp.float32)
            denom = (jnp.sum(ref_cnt, axis=1, keepdims=True)
                     + jnp.sum(hyp_cnt, axis=1, keepdims=True)).astype(jnp.float32)

        # F1 = 2*p*r/(p+r) == 2*overlap/(ref_len+hyp_len); max(.,1) guards the
        # all-empty pair.  Direct (BT, 1) column store — no in-kernel
        # transpose (the whole output is only B floats).
        f1_ref[...] = 2.0 * overlap / jnp.maximum(denom, 1.0)

    return kernel


def rouge1_f1(refs, hyps, *, block_b=None):
    """Per-example ROUGE-1 F1 over integer token ids.  Returns (B,) f32."""
    B, L = refs.shape
    assert hyps.shape == (B, L), "refs and hyps must have the same shape"
    refs = refs.astype(jnp.int32)
    hyps = hyps.astype(jnp.int32)

    compute_dtype = _counts_dtype(L)

    # Batch tile: multiple of 8 (sublane), small enough that the count planes
    # plus temporaries stay under the vreg budget, and (when possible) at
    # least 2 blocks so the "parallel" axis can shard across v7x's two TCs.
    if block_b is None:
        cap = 64 if compute_dtype == jnp.bfloat16 else 32
        Bp = max(8, -(-B // 8) * 8)
        cap_eff = min(cap, Bp // 2) if Bp >= 16 else min(cap, Bp)
        block_b = max(bb for bb in range(8, cap_eff + 1, 8) if Bp % bb == 0)
    else:
        assert block_b % 8 == 0, "block_b must be a multiple of 8"
        Bp = -(-B // block_b) * block_b

    if Bp != B:  # pad with all-PAD rows (they score 0) and slice afterwards
        pad = jnp.full((Bp - B, L), PAD, dtype=jnp.int32)
        refs = jnp.concatenate([refs, pad], axis=0)
        hyps = jnp.concatenate([hyps, pad], axis=0)

    grid_b = Bp // block_b
    out = pl.pallas_call(
        _make_rouge1_kernel(L, compute_dtype),
        out_shape=jax.ShapeDtypeStruct((Bp, 1), jnp.float32),
        grid_spec=pltpu.PrefetchScalarGridSpec(
            num_scalar_prefetch=0,
            grid=(grid_b,),
            in_specs=[pl.BlockSpec((block_b, L), lambda i: (i, 0)),
                      pl.BlockSpec((block_b, L), lambda i: (i, 0))],
            out_specs=pl.BlockSpec((block_b, 1), lambda i: (i, 0)),
        ),
        compiler_params=pltpu.CompilerParams(
            dimension_semantics=("parallel",)),
    )(refs, hyps)
    return out[:B, 0]


@jax.jit
def _rouge1_forward(refs, hyps):
    f1 = rouge1_f1(refs, hyps)
    return jnp.mean(f1), f1


class Rouge:
    """Mirrors myscorers.rouge.Rouge.forward on tokenized integer inputs."""

    def __init__(self, rouges):
        self.rouges = [r.replace('rougel', 'rougeL') for r in rouges]
        # TODO(synk): raw-string tokenization, Porter stemming and rougeL (LCS)
        # have no tensor/Pallas form; only rouge1 unigram F1 on token ids.

    def forward(self, refs, hyps):
        mean_f1, f1 = _rouge1_forward(refs, hyps)
        return mean_f1, f1


def _reference_f1(refs, hyps):
    """Pure numpy ROUGE-1 F1 (clipped unigram overlap) for verification."""
    refs = np.asarray(refs)
    hyps = np.asarray(hyps)
    out = []
    for r, h in zip(refs, hyps):
        r = r[(r >= 0) & (r < V)]
        h = h[(h >= 0) & (h < V)]
        rc = np.bincount(r, minlength=V)
        hc = np.bincount(h, minlength=V)
        overlap = np.minimum(rc, hc).sum()
        denom = len(r) + len(h)
        out.append(0.0 if denom == 0 else 2.0 * overlap / denom)
    return np.array(out, dtype=np.float32)


if __name__ == "__main__":
    key = jax.random.PRNGKey(0)
    k1, k2, k3, k4, k5, k6 = jax.random.split(key, 6)

    B, L = 16, 16
    ref_tok = jax.random.randint(k1, (B, L), 0, 32, dtype=jnp.int32)
    hyp_tok = jax.random.randint(k2, (B, L), 0, 32, dtype=jnp.int32)
    ref_lens = jax.random.randint(k3, (B, 1), 4, L + 1, dtype=jnp.int32)
    hyp_lens = jax.random.randint(k4, (B, 1), 4, L + 1, dtype=jnp.int32)

    pos = jnp.arange(L, dtype=jnp.int32)[None, :]
    refs = jnp.where(pos < ref_lens, ref_tok, PAD)
    hyps = jnp.where(pos < hyp_lens, hyp_tok, PAD)
    # Edge cases: both-empty pair and empty-hypothesis pair must yield F1 = 0.
    refs = refs.at[0].set(PAD)
    hyps = hyps.at[0].set(PAD)
    hyps = hyps.at[1].set(PAD)

    scorer = Rouge(["rouge1"])
    mean_f1, f1 = scorer.forward(refs, hyps)
    jax.block_until_ready((mean_f1, f1))

    expected = _reference_f1(refs, hyps)
    np.testing.assert_allclose(np.asarray(f1), expected, rtol=1e-5, atol=1e-6)
    np.testing.assert_allclose(float(mean_f1), float(expected.mean()),
                               rtol=1e-5, atol=1e-6)

    # Single-block grid path (block_b = B).
    f1_one = rouge1_f1(refs, hyps, block_b=16)
    jax.block_until_ready(f1_one)
    np.testing.assert_allclose(np.asarray(f1_one), expected,
                               rtol=1e-5, atol=1e-6)

    # Ragged batch (B not a multiple of 8) with some out-of-vocab ids (>= V):
    # exercises the wrapper-side padding and the id-filtering semantics.
    B2 = 10
    refs2 = jax.random.randint(k5, (B2, L), 0, 192, dtype=jnp.int32)
    hyps2 = jax.random.randint(k6, (B2, L), 0, 192, dtype=jnp.int32)
    refs2 = refs2.at[3, 8:].set(PAD)
    hyps2 = hyps2.at[3, 4:].set(PAD)
    f1_2 = rouge1_f1(refs2, hyps2)
    jax.block_until_ready(f1_2)
    np.testing.assert_allclose(np.asarray(f1_2), _reference_f1(refs2, hyps2),
                               rtol=1e-5, atol=1e-6)

    print("KERNEL_OK")
</pallas_src>

<mosaic_0001>
module attributes {stable_mosaic.version = 11 : i64} {
  func.func @kernel(%arg0: i32, %arg1: memref<8x16xi32, #tpu.memory_space<vmem>>, %arg2: memref<8x16xi32, #tpu.memory_space<vmem>>, %arg3: memref<8x1xf32, #tpu.memory_space<vmem>>) attributes {dimension_semantics = [#tpu.dimension_semantics<parallel>], iteration_bounds = array<i64: 2>, scalar_prefetch = 0 : i64, scratch_operands = 0 : i64, tpu.core_type = #tpu.core_type<tc>, window_params = [{transform_indices = @transform_0, window_bounds = array<i64: 8, 16>}, {transform_indices = @transform_1, window_bounds = array<i64: 8, 16>}, {transform_indices = @transform_2, window_bounds = array<i64: 8, 1>}]} {
    %c0 = arith.constant 0 : index
    %c0_0 = arith.constant 0 : index
    %0 = vector.load %arg1[%c0, %c0_0] : memref<8x16xi32, #tpu.memory_space<vmem>>, vector<8x16xi32>
    %1 = arith.sitofp %0 : vector<8x16xi32> to vector<8x16xbf16>
    %c0_1 = arith.constant 0 : index
    %c0_2 = arith.constant 0 : index
    %2 = vector.load %arg2[%c0_1, %c0_2] : memref<8x16xi32, #tpu.memory_space<vmem>>, vector<8x16xi32>
    %3 = arith.sitofp %2 : vector<8x16xi32> to vector<8x16xbf16>
    %4 = tpu.iota {dimensions = array<i32: 1>} : vector<8x128xi32>
    %5 = arith.sitofp %4 : vector<8x128xi32> to vector<8x128xbf16>
    %cst = arith.constant 0.000000e+00 : bf16
    %6 = vector.broadcast %cst : bf16 to vector<8x128xbf16>
    %cst_3 = arith.constant 0.000000e+00 : bf16
    %7 = vector.broadcast %cst_3 : bf16 to vector<8x128xbf16>
    %8 = vector.extract_strided_slice %1 {offsets = [0, 0], sizes = [8, 1], strides = [1, 1]} : vector<8x16xbf16> to vector<8x1xbf16>
    %9 = vector.broadcast %8 : vector<8x1xbf16> to vector<8x128xbf16>
    %10 = arith.cmpf oeq, %9, %5 : vector<8x128xbf16>
    %11 = arith.extui %10 : vector<8x128xi1> to vector<8x128xi32>
    %12 = arith.sitofp %11 : vector<8x128xi32> to vector<8x128xf32>
    %13 = arith.truncf %12 : vector<8x128xf32> to vector<8x128xbf16>
    %14 = arith.addf %6, %13 : vector<8x128xbf16>
    %15 = vector.extract_strided_slice %3 {offsets = [0, 0], sizes = [8, 1], strides = [1, 1]} : vector<8x16xbf16> to vector<8x1xbf16>
    %16 = vector.broadcast %15 : vector<8x1xbf16> to vector<8x128xbf16>
    %17 = arith.cmpf oeq, %16, %5 : vector<8x128xbf16>
    %18 = arith.extui %17 : vector<8x128xi1> to vector<8x128xi32>
    %19 = arith.sitofp %18 : vector<8x128xi32> to vector<8x128xf32>
    %20 = arith.truncf %19 : vector<8x128xf32> to vector<8x128xbf16>
    %21 = arith.addf %7, %20 : vector<8x128xbf16>
    %22 = vector.extract_strided_slice %1 {offsets = [0, 1], sizes = [8, 1], strides = [1, 1]} : vector<8x16xbf16> to vector<8x1xbf16>
    %23 = vector.broadcast %22 : vector<8x1xbf16> to vector<8x128xbf16>
    %24 = arith.cmpf oeq, %23, %5 : vector<8x128xbf16>
    %25 = arith.extui %24 : vector<8x128xi1> to vector<8x128xi32>
    %26 = arith.sitofp %25 : vector<8x128xi32> to vector<8x128xf32>
    %27 = arith.truncf %26 : vector<8x128xf32> to vector<8x128xbf16>
    %28 = arith.addf %14, %27 : vector<8x128xbf16>
    %29 = vector.extract_strided_slice %3 {offsets = [0, 1], sizes = [8, 1], strides = [1, 1]} : vector<8x16xbf16> to vector<8x1xbf16>
    %30 = vector.broadcast %29 : vector<8x1xbf16> to vector<8x128xbf16>
    %31 = arith.cmpf oeq, %30, %5 : vector<8x128xbf16>
    %32 = arith.extui %31 : vector<8x128xi1> to vector<8x128xi32>
    %33 = arith.sitofp %32 : vector<8x128xi32> to vector<8x128xf32>
    %34 = arith.truncf %33 : vector<8x128xf32> to vector<8x128xbf16>
    %35 = arith.addf %21, %34 : vector<8x128xbf16>
    %36 = vector.extract_strided_slice %1 {offsets = [0, 2], sizes = [8, 1], strides = [1, 1]} : vector<8x16xbf16> to vector<8x1xbf16>
    %37 = vector.broadcast %36 : vector<8x1xbf16> to vector<8x128xbf16>
    %38 = arith.cmpf oeq, %37, %5 : vector<8x128xbf16>
    %39 = arith.extui %38 : vector<8x128xi1> to vector<8x128xi32>
    %40 = arith.sitofp %39 : vector<8x128xi32> to vector<8x128xf32>
    %41 = arith.truncf %40 : vector<8x128xf32> to vector<8x128xbf16>
    %42 = arith.addf %28, %41 : vector<8x128xbf16>
    %43 = vector.extract_strided_slice %3 {offsets = [0, 2], sizes = [8, 1], strides = [1, 1]} : vector<8x16xbf16> to vector<8x1xbf16>
    %44 = vector.broadcast %43 : vector<8x1xbf16> to vector<8x128xbf16>
    %45 = arith.cmpf oeq, %44, %5 : vector<8x128xbf16>
    %46 = arith.extui %45 : vector<8x128xi1> to vector<8x128xi32>
    %47 = arith.sitofp %46 : vector<8x128xi32> to vector<8x128xf32>
    %48 = arith.truncf %47 : vector<8x128xf32> to vector<8x128xbf16>
    %49 = arith.addf %35, %48 : vector<8x128xbf16>
    %50 = vector.extract_strided_slice %1 {offsets = [0, 3], sizes = [8, 1], strides = [1, 1]} : vector<8x16xbf16> to vector<8x1xbf16>
    %51 = vector.broadcast %50 : vector<8x1xbf16> to vector<8x128xbf16>
    %52 = arith.cmpf oeq, %51, %5 : vector<8x128xbf16>
    %53 = arith.extui %52 : vector<8x128xi1> to vector<8x128xi32>
    %54 = arith.sitofp %53 : vector<8x128xi32> to vector<8x128xf32>
    %55 = arith.truncf %54 : vector<8x128xf32> to vector<8x128xbf16>
    %56 = arith.addf %42, %55 : vector<8x128xbf16>
    %57 = vector.extract_strided_slice %3 {offsets = [0, 3], sizes = [8, 1], strides = [1, 1]} : vector<8x16xbf16> to vector<8x1xbf16>
    %58 = vector.broadcast %57 : vector<8x1xbf16> to vector<8x128xbf16>
    %59 = arith.cmpf oeq, %58, %5 : vector<8x128xbf16>
    %60 = arith.extui %59 : vector<8x128xi1> to vector<8x128xi32>
    %61 = arith.sitofp %60 : vector<8x128xi32> to vector<8x128xf32>
    %62 = arith.truncf %61 : vector<8x128xf32> to vector<8x128xbf16>
    %63 = arith.addf %49, %62 : vector<8x128xbf16>
    %64 = vector.extract_strided_slice %1 {offsets = [0, 4], sizes = [8, 1], strides = [1, 1]} : vector<8x16xbf16> to vector<8x1xbf16>
    %65 = vector.broadcast %64 : vector<8x1xbf16> to vector<8x128xbf16>
    %66 = arith.cmpf oeq, %65, %5 : vector<8x128xbf16>
    %67 = arith.extui %66 : vector<8x128xi1> to vector<8x128xi32>
    %68 = arith.sitofp %67 : vector<8x128xi32> to vector<8x128xf32>
    %69 = arith.truncf %68 : vector<8x128xf32> to vector<8x128xbf16>
    %70 = arith.addf %56, %69 : vector<8x128xbf16>
    %71 = vector.extract_strided_slice %3 {offsets = [0, 4], sizes = [8, 1], strides = [1, 1]} : vector<8x16xbf16> to vector<8x1xbf16>
    %72 = vector.broadcast %71 : vector<8x1xbf16> to vector<8x128xbf16>
    %73 = arith.cmpf oeq, %72, %5 : vector<8x128xbf16>
    %74 = arith.extui %73 : vector<8x128xi1> to vector<8x128xi32>
    %75 = arith.sitofp %74 : vector<8x128xi32> to vector<8x128xf32>
    %76 = arith.truncf %75 : vector<8x128xf32> to vector<8x128xbf16>
    %77 = arith.addf %63, %76 : vector<8x128xbf16>
    %78 = vector.extract_strided_slice %1 {offsets = [0, 5], sizes = [8, 1], strides = [1, 1]} : vector<8x16xbf16> to vector<8x1xbf16>
    %79 = vector.broadcast %78 : vector<8x1xbf16> to vector<8x128xbf16>
    %80 = arith.cmpf oeq, %79, %5 : vector<8x128xbf16>
    %81 = arith.extui %80 : vector<8x128xi1> to vector<8x128xi32>
    %82 = arith.sitofp %81 : vector<8x128xi32> to vector<8x128xf32>
    %83 = arith.truncf %82 : vector<8x128xf32> to vector<8x128xbf16>
    %84 = arith.addf %70, %83 : vector<8x128xbf16>
    %85 = vector.extract_strided_slice %3 {offsets = [0, 5], sizes = [8, 1], strides = [1, 1]} : vector<8x16xbf16> to vector<8x1xbf16>
    %86 = vector.broadcast %85 : vector<8x1xbf16> to vector<8x128xbf16>
    %87 = arith.cmpf oeq, %86, %5 : vector<8x128xbf16>
    %88 = arith.extui %87 : vector<8x128xi1> to vector<8x128xi32>
    %89 = arith.sitofp %88 : vector<8x128xi32> to vector<8x128xf32>
    %90 = arith.truncf %89 : vector<8x128xf32> to vector<8x128xbf16>
    %91 = arith.addf %77, %90 : vector<8x128xbf16>
    %92 = vector.extract_strided_slice %1 {offsets = [0, 6], sizes = [8, 1], strides = [1, 1]} : vector<8x16xbf16> to vector<8x1xbf16>
    %93 = vector.broadcast %92 : vector<8x1xbf16> to vector<8x128xbf16>
    %94 = arith.cmpf oeq, %93, %5 : vector<8x128xbf16>
    %95 = arith.extui %94 : vector<8x128xi1> to vector<8x128xi32>
    %96 = arith.sitofp %95 : vector<8x128xi32> to vector<8x128xf32>
    %97 = arith.truncf %96 : vector<8x128xf32> to vector<8x128xbf16>
    %98 = arith.addf %84, %97 : vector<8x128xbf16>
    %99 = vector.extract_strided_slice %3 {offsets = [0, 6], sizes = [8, 1], strides = [1, 1]} : vector<8x16xbf16> to vector<8x1xbf16>
    %100 = vector.broadcast %99 : vector<8x1xbf16> to vector<8x128xbf16>
    %101 = arith.cmpf oeq, %100, %5 : vector<8x128xbf16>
    %102 = arith.extui %101 : vector<8x128xi1> to vector<8x128xi32>
    %103 = arith.sitofp %102 : vector<8x128xi32> to vector<8x128xf32>
    %104 = arith.truncf %103 : vector<8x128xf32> to vector<8x128xbf16>
    %105 = arith.addf %91, %104 : vector<8x128xbf16>
    %106 = vector.extract_strided_slice %1 {offsets = [0, 7], sizes = [8, 1], strides = [1, 1]} : vector<8x16xbf16> to vector<8x1xbf16>
    %107 = vector.broadcast %106 : vector<8x1xbf16> to vector<8x128xbf16>
    %108 = arith.cmpf oeq, %107, %5 : vector<8x128xbf16>
    %109 = arith.extui %108 : vector<8x128xi1> to vector<8x128xi32>
    %110 = arith.sitofp %109 : vector<8x128xi32> to vector<8x128xf32>
    %111 = arith.truncf %110 : vector<8x128xf32> to vector<8x128xbf16>
    %112 = arith.addf %98, %111 : vector<8x128xbf16>
    %113 = vector.extract_strided_slice %3 {offsets = [0, 7], sizes = [8, 1], strides = [1, 1]} : vector<8x16xbf16> to vector<8x1xbf16>
    %114 = vector.broadcast %113 : vector<8x1xbf16> to vector<8x128xbf16>
    %115 = arith.cmpf oeq, %114, %5 : vector<8x128xbf16>
    %116 = arith.extui %115 : vector<8x128xi1> to vector<8x128xi32>
    %117 = arith.sitofp %116 : vector<8x128xi32> to vector<8x128xf32>
    %118 = arith.truncf %117 : vector<8x128xf32> to vector<8x128xbf16>
    %119 = arith.addf %105, %118 : vector<8x128xbf16>
    %120 = vector.extract_strided_slice %1 {offsets = [0, 8], sizes = [8, 1], strides = [1, 1]} : vector<8x16xbf16> to vector<8x1xbf16>
    %121 = vector.broadcast %120 : vector<8x1xbf16> to vector<8x128xbf16>
    %122 = arith.cmpf oeq, %121, %5 : vector<8x128xbf16>
    %123 = arith.extui %122 : vector<8x128xi1> to vector<8x128xi32>
    %124 = arith.sitofp %123 : vector<8x128xi32> to vector<8x128xf32>
    %125 = arith.truncf %124 : vector<8x128xf32> to vector<8x128xbf16>
    %126 = arith.addf %112, %125 : vector<8x128xbf16>
    %127 = vector.extract_strided_slice %3 {offsets = [0, 8], sizes = [8, 1], strides = [1, 1]} : vector<8x16xbf16> to vector<8x1xbf16>
    %128 = vector.broadcast %127 : vector<8x1xbf16> to vector<8x128xbf16>
    %129 = arith.cmpf oeq, %128, %5 : vector<8x128xbf16>
    %130 = arith.extui %129 : vector<8x128xi1> to vector<8x128xi32>
    %131 = arith.sitofp %130 : vector<8x128xi32> to vector<8x128xf32>
    %132 = arith.truncf %131 : vector<8x128xf32> to vector<8x128xbf16>
    %133 = arith.addf %119, %132 : vector<8x128xbf16>
    %134 = vector.extract_strided_slice %1 {offsets = [0, 9], sizes = [8, 1], strides = [1, 1]} : vector<8x16xbf16> to vector<8x1xbf16>
    %135 = vector.broadcast %134 : vector<8x1xbf16> to vector<8x128xbf16>
    %136 = arith.cmpf oeq, %135, %5 : vector<8x128xbf16>
    %137 = arith.extui %136 : vector<8x128xi1> to vector<8x128xi32>
    %138 = arith.sitofp %137 : vector<8x128xi32> to vector<8x128xf32>
    %139 = arith.truncf %138 : vector<8x128xf32> to vector<8x128xbf16>
    %140 = arith.addf %126, %139 : vector<8x128xbf16>
    %141 = vector.extract_strided_slice %3 {offsets = [0, 9], sizes = [8, 1], strides = [1, 1]} : vector<8x16xbf16> to vector<8x1xbf16>
    %142 = vector.broadcast %141 : vector<8x1xbf16> to vector<8x128xbf16>
    %143 = arith.cmpf oeq, %142, %5 : vector<8x128xbf16>
    %144 = arith.extui %143 : vector<8x128xi1> to vector<8x128xi32>
    %145 = arith.sitofp %144 : vector<8x128xi32> to vector<8x128xf32>
    %146 = arith.truncf %145 : vector<8x128xf32> to vector<8x128xbf16>
    %147 = arith.addf %133, %146 : vector<8x128xbf16>
    %148 = vector.extract_strided_slice %1 {offsets = [0, 10], sizes = [8, 1], strides = [1, 1]} : vector<8x16xbf16> to vector<8x1xbf16>
    %149 = vector.broadcast %148 : vector<8x1xbf16> to vector<8x128xbf16>
    %150 = arith.cmpf oeq, %149, %5 : vector<8x128xbf16>
    %151 = arith.extui %150 : vector<8x128xi1> to vector<8x128xi32>
    %152 = arith.sitofp %151 : vector<8x128xi32> to vector<8x128xf32>
    %153 = arith.truncf %152 : vector<8x128xf32> to vector<8x128xbf16>
    %154 = arith.addf %140, %153 : vector<8x128xbf16>
    %155 = vector.extract_strided_slice %3 {offsets = [0, 10], sizes = [8, 1], strides = [1, 1]} : vector<8x16xbf16> to vector<8x1xbf16>
    %156 = vector.broadcast %155 : vector<8x1xbf16> to vector<8x128xbf16>
    %157 = arith.cmpf oeq, %156, %5 : vector<8x128xbf16>
    %158 = arith.extui %157 : vector<8x128xi1> to vector<8x128xi32>
    %159 = arith.sitofp %158 : vector<8x128xi32> to vector<8x128xf32>
    %160 = arith.truncf %159 : vector<8x128xf32> to vector<8x128xbf16>
    %161 = arith.addf %147, %160 : vector<8x128xbf16>
    %162 = vector.extract_strided_slice %1 {offsets = [0, 11], sizes = [8, 1], strides = [1, 1]} : vector<8x16xbf16> to vector<8x1xbf16>
    %163 = vector.broadcast %162 : vector<8x1xbf16> to vector<8x128xbf16>
    %164 = arith.cmpf oeq, %163, %5 : vector<8x128xbf16>
    %165 = arith.extui %164 : vector<8x128xi1> to vector<8x128xi32>
    %166 = arith.sitofp %165 : vector<8x128xi32> to vector<8x128xf32>
    %167 = arith.truncf %166 : vector<8x128xf32> to vector<8x128xbf16>
    %168 = arith.addf %154, %167 : vector<8x128xbf16>
    %169 = vector.extract_strided_slice %3 {offsets = [0, 11], sizes = [8, 1], strides = [1, 1]} : vector<8x16xbf16> to vector<8x1xbf16>
    %170 = vector.broadcast %169 : vector<8x1xbf16> to vector<8x128xbf16>
    %171 = arith.cmpf oeq, %170, %5 : vector<8x128xbf16>
    %172 = arith.extui %171 : vector<8x128xi1> to vector<8x128xi32>
    %173 = arith.sitofp %172 : vector<8x128xi32> to vector<8x128xf32>
    %174 = arith.truncf %173 : vector<8x128xf32> to vector<8x128xbf16>
    %175 = arith.addf %161, %174 : vector<8x128xbf16>
    %176 = vector.extract_strided_slice %1 {offsets = [0, 12], sizes = [8, 1], strides = [1, 1]} : vector<8x16xbf16> to vector<8x1xbf16>
    %177 = vector.broadcast %176 : vector<8x1xbf16> to vector<8x128xbf16>
    %178 = arith.cmpf oeq, %177, %5 : vector<8x128xbf16>
    %179 = arith.extui %178 : vector<8x128xi1> to vector<8x128xi32>
    %180 = arith.sitofp %179 : vector<8x128xi32> to vector<8x128xf32>
    %181 = arith.truncf %180 : vector<8x128xf32> to vector<8x128xbf16>
    %182 = arith.addf %168, %181 : vector<8x128xbf16>
    %183 = vector.extract_strided_slice %3 {offsets = [0, 12], sizes = [8, 1], strides = [1, 1]} : vector<8x16xbf16> to vector<8x1xbf16>
    %184 = vector.broadcast %183 : vector<8x1xbf16> to vector<8x128xbf16>
    %185 = arith.cmpf oeq, %184, %5 : vector<8x128xbf16>
    %186 = arith.extui %185 : vector<8x128xi1> to vector<8x128xi32>
    %187 = arith.sitofp %186 : vector<8x128xi32> to vector<8x128xf32>
    %188 = arith.truncf %187 : vector<8x128xf32> to vector<8x128xbf16>
    %189 = arith.addf %175, %188 : vector<8x128xbf16>
    %190 = vector.extract_strided_slice %1 {offsets = [0, 13], sizes = [8, 1], strides = [1, 1]} : vector<8x16xbf16> to vector<8x1xbf16>
    %191 = vector.broadcast %190 : vector<8x1xbf16> to vector<8x128xbf16>
    %192 = arith.cmpf oeq, %191, %5 : vector<8x128xbf16>
    %193 = arith.extui %192 : vector<8x128xi1> to vector<8x128xi32>
    %194 = arith.sitofp %193 : vector<8x128xi32> to vector<8x128xf32>
    %195 = arith.truncf %194 : vector<8x128xf32> to vector<8x128xbf16>
    %196 = arith.addf %182, %195 : vector<8x128xbf16>
    %197 = vector.extract_strided_slice %3 {offsets = [0, 13], sizes = [8, 1], strides = [1, 1]} : vector<8x16xbf16> to vector<8x1xbf16>
    %198 = vector.broadcast %197 : vector<8x1xbf16> to vector<8x128xbf16>
    %199 = arith.cmpf oeq, %198, %5 : vector<8x128xbf16>
    %200 = arith.extui %199 : vector<8x128xi1> to vector<8x128xi32>
    %201 = arith.sitofp %200 : vector<8x128xi32> to vector<8x128xf32>
    %202 = arith.truncf %201 : vector<8x128xf32> to vector<8x128xbf16>
    %203 = arith.addf %189, %202 : vector<8x128xbf16>
    %204 = vector.extract_strided_slice %1 {offsets = [0, 14], sizes = [8, 1], strides = [1, 1]} : vector<8x16xbf16> to vector<8x1xbf16>
    %205 = vector.broadcast %204 : vector<8x1xbf16> to vector<8x128xbf16>
    %206 = arith.cmpf oeq, %205, %5 : vector<8x128xbf16>
    %207 = arith.extui %206 : vector<8x128xi1> to vector<8x128xi32>
    %208 = arith.sitofp %207 : vector<8x128xi32> to vector<8x128xf32>
    %209 = arith.truncf %208 : vector<8x128xf32> to vector<8x128xbf16>
    %210 = arith.addf %196, %209 : vector<8x128xbf16>
    %211 = vector.extract_strided_slice %3 {offsets = [0, 14], sizes = [8, 1], strides = [1, 1]} : vector<8x16xbf16> to vector<8x1xbf16>
    %212 = vector.broadcast %211 : vector<8x1xbf16> to vector<8x128xbf16>
    %213 = arith.cmpf oeq, %212, %5 : vector<8x128xbf16>
    %214 = arith.extui %213 : vector<8x128xi1> to vector<8x128xi32>
    %215 = arith.sitofp %214 : vector<8x128xi32> to vector<8x128xf32>
    %216 = arith.truncf %215 : vector<8x128xf32> to vector<8x128xbf16>
    %217 = arith.addf %203, %216 : vector<8x128xbf16>
    %218 = vector.extract_strided_slice %1 {offsets = [0, 15], sizes = [8, 1], strides = [1, 1]} : vector<8x16xbf16> to vector<8x1xbf16>
    %219 = vector.broadcast %218 : vector<8x1xbf16> to vector<8x128xbf16>
    %220 = arith.cmpf oeq, %219, %5 : vector<8x128xbf16>
    %221 = arith.extui %220 : vector<8x128xi1> to vector<8x128xi32>
    %222 = arith.sitofp %221 : vector<8x128xi32> to vector<8x128xf32>
    %223 = arith.truncf %222 : vector<8x128xf32> to vector<8x128xbf16>
    %224 = arith.addf %210, %223 : vector<8x128xbf16>
    %225 = vector.extract_strided_slice %3 {offsets = [0, 15], sizes = [8, 1], strides = [1, 1]} : vector<8x16xbf16> to vector<8x1xbf16>
    %226 = vector.broadcast %225 : vector<8x1xbf16> to vector<8x128xbf16>
    %227 = arith.cmpf oeq, %226, %5 : vector<8x128xbf16>
    %228 = arith.extui %227 : vector<8x128xi1> to vector<8x128xi32>
    %229 = arith.sitofp %228 : vector<8x128xi32> to vector<8x128xf32>
    %230 = arith.truncf %229 : vector<8x128xf32> to vector<8x128xbf16>
    %231 = arith.addf %217, %230 : vector<8x128xbf16>
    %cst_4 = arith.constant 1.000000e+00 : bf16
    %232 = vector.broadcast %cst_4 : bf16 to vector<128x1xbf16>
    %233 = arith.minimumf %224, %231 : vector<8x128xbf16>
    %cst_5 = arith.constant dense<0.000000e+00> : vector<8x1xf32>
    %234 = tpu.matmul %233, %232, %cst_5 {dimension_numbers = #tpu.dot_dimension_numbers<[1], [0], [0], [1], [0, 0, 1, 1], [], []>} : vector<8x128xbf16>, vector<128x1xbf16>, vector<8x1xf32> -> vector<8x1xf32>
    %cst_6 = arith.constant dense<0.000000e+00> : vector<8x1xf32>
    %235 = tpu.matmul %224, %232, %cst_6 {dimension_numbers = #tpu.dot_dimension_numbers<[1], [0], [0], [1], [0, 0, 1, 1], [], []>} : vector<8x128xbf16>, vector<128x1xbf16>, vector<8x1xf32> -> vector<8x1xf32>
    %cst_7 = arith.constant dense<0.000000e+00> : vector<8x1xf32>
    %236 = tpu.matmul %231, %232, %cst_7 {dimension_numbers = #tpu.dot_dimension_numbers<[1], [0], [0], [1], [0, 0, 1, 1], [], []>} : vector<8x128xbf16>, vector<128x1xbf16>, vector<8x1xf32> -> vector<8x1xf32>
    %237 = arith.addf %235, %236 : vector<8x1xf32>
    %cst_8 = arith.constant 2.000000e+00 : f32
    %238 = vector.broadcast %cst_8 : f32 to vector<8x1xf32>
    %239 = arith.mulf %238, %234 : vector<8x1xf32>
    %cst_9 = arith.constant 1.000000e+00 : f32
    %240 = vector.broadcast %cst_9 : f32 to vector<8x1xf32>
    %241 = arith.maximumf %237, %240 : vector<8x1xf32>
    %242 = arith.divf %239, %241 : vector<8x1xf32>
    %c0_10 = arith.constant 0 : index
    %c0_11 = arith.constant 0 : index
    %243 = vector.load %arg3[%c0_10, %c0_11] : memref<8x1xf32, #tpu.memory_space<vmem>>, vector<8x1xf32>
    tpu.vector_store %arg3[%c0_10, %c0_11], %242 {strides = array<i32>} : memref<8x1xf32, #tpu.memory_space<vmem>>, vector<8x1xf32>,
    return
  }
  func.func @transform_0(%arg0: i32) -> (i32, i32) {
    %c0_i32 = arith.constant 0 : i32
    %c0_i32_0 = arith.constant 0 : i32
    return %arg0, %c0_i32 : i32, i32
  }
  func.func @transform_1(%arg0: i32) -> (i32, i32) {
    %c0_i32 = arith.constant 0 : i32
    %c0_i32_0 = arith.constant 0 : i32
    return %arg0, %c0_i32 : i32, i32
  }
  func.func @transform_2(%arg0: i32) -> (i32, i32) {
    %c0_i32 = arith.constant 0 : i32
    %c0_i32_0 = arith.constant 0 : i32
    return %arg0, %c0_i32 : i32, i32
  }
}

</mosaic_0001>

<bundles_post_ra>
// kernel: _rouge1_forward.1
= control target key start
LH: loop header
LB: loop body
LE: loop exit
PB: predicated region body
PF: predicated region fallthrough
CT: control target
= control target key end

     0   :  { %7 = vsyncpa [#allocation3], 0  ;;  %s1531_s0 = inlined_call_operand.hbm [shape: s32[16,16], index: 0, kind: input, shape index: {}]   ;;  %s1532_s1 = inlined_call_operand.hbm [shape: s32[16,16], index: 1, kind: input, shape index: {}]   ;;  %s1533_s2 = inlined_call_operand.vmem [shape: f32[16,1], index: 2, kind: output, shape index: {}]  }
   0x1   :  { %9 = vsyncpa [#allocation3 + $0x1], 0 }
   0x2   :  { %10 = vsyncpa [#allocation5], 0 }
   0x3   :  { %12 = vsyncpa [#allocation5 + $0x1], 0  ;;  %s1166_s9 = smov 0   ;;  %s1168_s10 = smov 0  }
   0x4   :  { %s1170_s11 = smov 0   ;;  %s1172_s12 = smov 0  }
   0x5 LB: > { %s1185_s13 = sadd.s32 4294967295, %s1128_s12   ;;  %s1188_s14 = sadd.s32 1, %s1128_s12   ;;  %s1128_s12 = sphi %s1172_s12, %s1549_s12   ;;  %s1124_s11 = sphi %s1170_s11, %s1548_s11   ;;  %s1120_s10 = sphi %s1168_s10, %s1547_s10   ;;  %s1116_s9 = sphi %s1166_s9, %s1546_s9  }
   0x6   : > { %s22_s15 = ssub.s32 %s1128_s12, %s1188_s14  ;;  %s25_s16 = sadd.s32 1, %s1124_s11 }
   0x7   : > { %p23_p0 = scmp.eq.s32.totalorder %s22_s15, 0  ;;  %p32_p1 = scmp.ne.s32.totalorder %s1124_s11, %s1120_s10 }
   0x8   : > { %p33_p2 = scmp.eq.s32.totalorder %s1128_s12, 0  ;;  %p38_p3 = scmp.ne.s32.totalorder %s1120_s10, %s1116_s9 }
   0x9   : > { %s1198_s17 = scalar_select %p23_p0, %s1124_s11, %s25_s16  }
   0xa   : > { %p34_p4 = por %p33_p2, %p32_p1  ;;  %p39_p5 = scmp.eq.s32.totalorder %s1185_s13, 0 }
   0xb   : > { %p954_p6 = scmp.lt.s32.totalorder %s1128_s12, 2  ;;  %s1207_s19 = sand.u32 1, %s1124_s11  }
   0xc   : > { %p1202_p7 = por %p39_p5, %p38_p3  ;;  %s814_s20 = sshll.u32 %s1207_s19, 3 }
   0xd   : > { %s815_s21 = sshll.u32 %s1128_s12, 7  ;;  %s118_s25 = scalar_lea.vmem [#allocation2], %s814_s20 }
   0xe   : > { %s1535_s18 = scalar_select %p1202_p7, 1, 0 }
   0xf   : > { %s1216_s24 = scalar_lea.hbm %s1531_s0, %s815_s21  ;;  %s125_s26 = sshll.u32 %s118_s25, 4  ;;  %s1220_s26 = int_to_ptr.vmem [resolvable:$true] %s125_s26 }
  0x10   : > { %p1222_p8 = pnand %p954_p6, %p34_p4  ;;  %s115_s28 = scalar_lea.sflag [#allocation3], %s1207_s19 }
  0x11   : > { %s1034_s29 = scalar_lea.hbm %s1216_s24, 128  ;;  %s1039_s4 = scalar_lea.hbm %s1531_s0, 256 }
  0x12   : > { %p1035_p11 = scmp.ne.s32.totalorder %s1216_s24, %s1034_s29  ;;  %p1036_p12 = pneg %p1222_p8 }
  0x13   : > { %p1040_p1 = scmp.lt.s32.totalorder %s1216_s24, %s1531_s0  ;;  %p1041_p2 = scmp.lt.s32.totalorder %s1039_s4, %s1034_s29 }
  0x14   : > { %p1037_p13 = pnand %p1036_p12, %p1035_p11 }
  0x15   : > { %p1042_p3 = por %p1041_p2, %p1040_p1 }
  0x16   : > { %p1038_p0 = pneg %p1037_p13 }
  0x18   : > { %p1043_p4 = pnand %p1042_p3, %p1038_p0 }
  0x1a   : > { %1046 = shalt.err (!%p1043_p4)
}
  0x1b   : > { %s1047_s7 = scalar_lea.vmem %s1220_s26, 128  ;;  %s1130_s8 = smov [#allocation2]  }
  0x1c   : > { %p1048_p5 = scmp.ne.s32.totalorder %s1220_s26, %s1047_s7  ;;  %s1052_s9 = sshll.u32 %s1130_s8, 4  ;;  %s1053_s9 = int_to_ptr.vmem [resolvable:$false] %s1052_s9 }
  0x1d   : > { %s1054_s15 = scalar_lea.vmem %s1053_s9, 256  ;;  %p1055_p13 = scmp.lt.s32.totalorder %s1220_s26, %s1053_s9 }
  0x1e   : > { %p1050_p6 = pnand %p1048_p5, %p1036_p12  ;;  %p1056_p9 = scmp.lt.s32.totalorder %s1054_s15, %s1047_s7 }
  0x20   : > { %p1051_p11 = pneg %p1050_p6  ;;  %p1057_p10 = por %p1056_p9, %p1055_p13 }
  0x22   : > { %p1058_p1 = pnand %p1057_p10, %p1051_p11 }
  0x24   : > { %1061 = shalt.err (!%p1058_p1)
}
  0x25   : > { %950 = dma.hbm_to_vmem [thread:$0]  (!%p1222_p8), %s1216_s24, 128, %s1220_s26, %s115_s28  }
  0x26   : > { %p1537_p0 = scmp.lt.s32.totalorder %s1128_s12, 3  ;;  %p1538_p2 = scmp.ge.s32.totalorder %s1128_s12, 1 }
  0x27   : > { %s1266_s25 = scalar_lea.hbm %s1532_s1, %s815_s21  ;;  %s136_s29 = scalar_lea.vmem [#allocation4], %s814_s20 }
  0x28   : > { %p1257_p3 = pnand %p1538_p2, %p1537_p0  ;;  %s143_s30 = sshll.u32 %s136_s29, 4  ;;  %s144_s30 = int_to_ptr.vmem [resolvable:$true] %s143_s30 }
  0x29   : > { %s133_s24 = scalar_lea.sflag [#allocation5], %s1207_s19  ;;  %s1062_s26 = scalar_lea.hbm %s1266_s25, 128 }
  0x2a   : > { %s1539_s16 = scalar_select %p1257_p3, 1, 0 }
  0x2b   : > { %p1063_p9 = scmp.ne.s32.totalorder %s1266_s25, %s1062_s26  ;;  %s1067_s3 = scalar_lea.hbm %s1532_s1, 256 }
  0x2c   : > { %p1068_p5 = scmp.lt.s32.totalorder %s1266_s25, %s1532_s1  ;;  %p1069_p6 = scmp.lt.s32.totalorder %s1067_s3, %s1062_s26 }
  0x2d   : > { %p1065_p10 = pnand %p1063_p9, %p1036_p12 }
  0x2e   : > { %p1070_p11 = por %p1069_p6, %p1068_p5 }
  0x2f   : > { %p1066_p4 = pneg %p1065_p10 }
  0x31   : > { %p1071_p13 = pnand %p1070_p11, %p1066_p4 }
  0x33   : > { %1074 = shalt.err (!%p1071_p13)
}
  0x34   : > { %s1075_s20 = scalar_lea.vmem %s144_s30, 128  ;;  %s1131_s19 = smov [#allocation4]  }
  0x35   : > { %p1076_p1 = scmp.ne.s32.totalorder %s144_s30, %s1075_s20  ;;  %s1080_s5 = sshll.u32 %s1131_s19, 4  ;;  %s1081_s5 = int_to_ptr.vmem [resolvable:$false] %s1080_s5 }
  0x36   : > { %s1082_s6 = scalar_lea.vmem %s1081_s5, 256  ;;  %p1083_p9 = scmp.lt.s32.totalorder %s144_s30, %s1081_s5 }
  0x37   : > { %p1078_p0 = pnand %p1076_p1, %p1036_p12  ;;  %p1084_p10 = scmp.lt.s32.totalorder %s1082_s6, %s1075_s20 }
  0x39   : > { %p1079_p2 = pneg %p1078_p0  ;;  %p1085_p7 = por %p1084_p10, %p1083_p9 }
  0x3b   : > { %p1086_p3 = pnand %p1085_p7, %p1079_p2 }
  0x3d   : > { %1089 = shalt.err (!%p1086_p3)
}
  0x3e   : > { %953 = dma.hbm_to_vmem [thread:$0]  (!%p1222_p8), %s1266_s25, 128, %s144_s30, %s133_s24  }
  0x3f   : > { %p1540_p4 = scmp.ne.s32.totalorder %s1539_s16, 0 }
  0x40   : > { %s154_s7 = sand.u32 (!%p1540_p4), 1, %s1120_s10   ;;  %p1541_p12 = scmp.ne.s32.totalorder (!%p1540_p4), %s1535_s18, 0 }
  0x41   : > { %152 = sbr.rel (%p1540_p4) target bundleno = 550 (0x226), region = 28  ;;  %s819_s8 = sshll.u32 (!%p1540_p4), %s154_s7, 3 }
  0x42   : > { %s155_s9 = scalar_lea.sflag (!%p1540_p4), [#allocation3], %s154_s7  ;;  %s158_s15 = scalar_lea.vmem (!%p1540_p4), [#allocation2], %s819_s8 }
  0x46   : > { %1107 = dma.done.wait (%p1541_p12), %s155_s9, 128  }
  0x47   : > { %1109 = vsyncadd (%p1541_p12), %s155_s9, 4294967168  ;;  %s164_s22 = scalar_lea.sflag [#allocation5], %s154_s7  ;;  %s167_s23 = scalar_lea.vmem [#allocation4], %s819_s8 }
  0x48   : > { %1111 = dma.done.wait (%p1541_p12), %s164_s22, 128  }
  0x49   : > { %1113 = vsyncadd (%p1541_p12), %s164_s22, 4294967168  ;;  %v1132_v0 = vmov 1   ;;  %v1133_v1 = vmov 0   ;;  %v1134_v2 = vmov 0.0   ;;  %v200_v3 = vld [vmem:[%s158_s15] sm:$0xff]  ;;  %v203_v4 = vld [vmem:[%s167_s23] sm:$0xff]  ;;  %v206_v27 = vlaneseq }
  0x4a   : > { %1007 = vset.pattern.permute.xlu1 %v1132_v0  ;;  %1006 = vset.pattern.permute.xlu0 %v1133_v1  ;;  %v201_v5 = vcvt.s32.f32 %v200_v3  ;;  %v204_v6 = vcvt.s32.f32 %v203_v4  ;;  %v1135_v9 = vmov 2   ;;  %v1136_v10 = vmov 3   ;;  %p192_p7 = scmp.lt.s32.totalorder %s1185_s13, 1 }
  0x4b   : > { %903 = vmatprep.subr.bf16.mxu1 %v1134_v2  ;;  %883 = vmatprep.subr.bf16.mxu0 %v1134_v2  ;;  %v1137_v11 = vmov 4   ;;  %v1138_v12 = vmov 5   ;;  %v1139_v13 = vmov 6   ;;  %v1140_v14 = vmov 8  }
  0x4c   : > { %v1303_v7 = vpack.c.bf16 %v201_v5, %v201_v5  ;;  %v1305_v8 = vpack.c.bf16 %v204_v6, %v204_v6  ;;  %v1141_v15 = vmov 9   ;;  %v1142_v16 = vmov 7   ;;  %s1551_s13 = smov (!%p192_p7, %s1185_s13), 1 }
  0x4d   : > { %v1143_v17 = vmov 11   ;;  %v1144_v18 = vmov 12   ;;  %v1145_v19 = vmov 14   ;;  %v1146_v20 = vmov 15   ;;  %s821_s18 = sshll.u32 %s1551_s13, 3 }
  0x4e   : > { %237 = vperm.xlu1 %1007, %v1303_v7   ;;  %212 = vperm.xlu0 %1006, %v1303_v7   ;;  %v1147_v21 = vmov 10   ;;  %v1148_v22 = vmov 1065369472   ;;  %v1149_v23 = vmov 13   ;;  %vm1150_vm0 = vmmov 0   ;;  %s195_s25 = scalar_lea.vmem %s1533_s2, %s821_s18 }
  0x4f   : > { %904 = vmatpush3.bf16.msra.mxu1 %v1148_v22  ;;  %884 = vmatpush3.bf16.msra.mxu0 %v1148_v22  ;;  %v207_v28 = vand.u32 127, %v206_v27 }
  0x50   : > { %905 = vmatprep.subr.bf16.mxu1 %v1134_v2  ;;  %885 = vmatprep.subr.bf16.mxu0 %v1134_v2 }
  0x51   : > { %919 = vmatprep.mubr.msk.bf16.mxu1 %vm1150_vm0, %v1134_v2  ;;  %899 = vmatprep.mubr.msk.bf16.mxu0 %vm1150_vm0, %v1134_v2  ;;  %v208_v31 = vcvt.s32.f32 %v207_v28 }
  0x52   : > { %249 = vperm.xlu1 %1007, %v1305_v8   ;;  %225 = vperm.xlu0 %1006, %v1305_v8  }
  0x53   : > { %906 = vmatpush3.bf16.msra.mxu1 %v1148_v22  ;;  %886 = vmatpush3.bf16.msra.mxu0 %v1148_v22  ;;  %v1374_v33 = vpack.c.bf16 %v208_v31, %v208_v31 }
  0x54   : > { %907 = vmatprep.subr.bf16.mxu1 %v1134_v2  ;;  %887 = vmatprep.subr.bf16.mxu0 %v1134_v2 }
  0x56   : > { %1009 = vset.pattern.permute.xlu1 %v1135_v9  ;;  %1008 = vset.pattern.permute.xlu0 %v1135_v9 }
  0x57   : > { %273 = vperm.xlu1 %1009, %v1305_v8   ;;  %261 = vperm.xlu0 %1008, %v1303_v7  }
  0x58   : > { %908 = vmatpush3.bf16.msra.mxu1 %v1148_v22  ;;  %888 = vmatpush3.bf16.msra.mxu0 %v1148_v22 }
  0x59   : > { %909 = vmatprep.subr.bf16.mxu1 %v1134_v2  ;;  %889 = vmatprep.subr.bf16.mxu0 %v1134_v2 }
  0x5b   : > { %1010 = vset.pattern.permute.xlu1 %v1136_v10  ;;  %1011 = vset.pattern.permute.xlu0 %v1136_v10 }
  0x5c   : > { %285 = vperm.xlu1 %1010, %v1303_v7   ;;  %297 = vperm.xlu0 %1011, %v1305_v8  }
  0x5d   : > { %910 = vmatpush3.bf16.msra.mxu1 %v1148_v22  ;;  %890 = vmatpush3.bf16.msra.mxu0 %v1148_v22 }
  0x5e   : > { %911 = vmatprep.subr.bf16.mxu1 %v1134_v2  ;;  %891 = vmatprep.subr.bf16.mxu0 %v1134_v2 }
  0x60   : > { %1012 = vset.pattern.permute.xlu1 %v1137_v11  ;;  %1013 = vset.pattern.permute.xlu0 %v1138_v12 }
  0x61   : > { %309 = vperm.xlu1 %1012, %v1303_v7   ;;  %333 = vperm.xlu0 %1013, %v1303_v7  }
  0x62   : > { %912 = vmatpush3.bf16.msra.mxu1 %v1148_v22  ;;  %892 = vmatpush3.bf16.msra.mxu0 %v1148_v22 }
  0x63   : > { %913 = vmatprep.subr.bf16.mxu1 %v1134_v2  ;;  %893 = vmatprep.subr.bf16.mxu0 %v1134_v2 }
  0x65   : > { %321 = vperm.xlu1 %1012, %v1305_v8   ;;  %1016 = vset.pattern.permute.xlu0 %v1139_v13 }
  0x66   : > { %369 = vperm.xlu0 %1016, %v1305_v8   ;;  %914 = vmatpush3.bf16.msra.mxu1 %v1148_v22 }
  0x67   : > { %915 = vmatprep.subr.bf16.mxu1 %v1134_v2  ;;  %894 = vmatpush3.bf16.msra.mxu0 %v1148_v22 }
  0x68   : > { %895 = vmatprep.subr.bf16.mxu0 %v1134_v2 }
  0x69   : > { %1014 = vset.pattern.permute.xlu1 %v1138_v12 }
  0x6a   : > { %345 = vperm.xlu1 %1014, %v1305_v8   ;;  %1018 = vset.pattern.permute.xlu0 %v1140_v14 }
  0x6b   : > { %405 = vperm.xlu0 %1018, %v1303_v7   ;;  %916 = vmatpush3.bf16.msra.mxu1 %v1148_v22 }
  0x6c   : > { %917 = vmatprep.subr.bf16.mxu1 %v1134_v2  ;;  %896 = vmatpush3.bf16.msra.mxu0 %v1148_v22 }
  0x6d   : > { %897 = vmatprep.subr.bf16.mxu0 %v1134_v2 }
  0x6e   : > { %1015 = vset.pattern.permute.xlu1 %v1139_v13 }
  0x6f   : > { %357 = vperm.xlu1 %1015, %v1303_v7   ;;  %1021 = vset.pattern.permute.xlu0 %v1141_v15 }
  0x70   : > { %441 = vperm.xlu0 %1021, %v1305_v8   ;;  %918 = vmatpush3.bf16.msra.mxu1 %v1148_v22 }
  0x71   : > { %898 = vmatpush3.bf16.msra.mxu0 %v1148_v22 }
  0x72   : > { %923 = vmatprep.subr.bf16.mxu0 %v1134_v2 }
  0x73   : > { %1017 = vset.pattern.permute.xlu1 %v1142_v16 }
  0x74   : > { %381 = vperm.xlu1 %1017, %v1303_v7   ;;  %1023 = vset.pattern.permute.xlu0 %v1143_v17 }
  0x75   : > { %477 = vperm.xlu0 %1023, %v1303_v7  }
  0x78   : > { %393 = vperm.xlu1 %1017, %v1305_v8  }
  0x79   : > { %1026 = vset.pattern.permute.xlu0 %v1144_v18 }
  0x7a   : > { %513 = vperm.xlu0 %1026, %v1305_v8  }
  0x7c   : > { %1019 = vset.pattern.permute.xlu1 %v1140_v14 }
  0x7d   : > { %417 = vperm.xlu1 %1019, %v1305_v8  }
  0x7e   : > { %1028 = vset.pattern.permute.xlu0 %v1145_v19 }
  0x7f   : > { %549 = vperm.xlu0 %1028, %v1303_v7  }
  0x81   : > { %1020 = vset.pattern.permute.xlu1 %v1141_v15 }
  0x82   : > { %429 = vperm.xlu1 %1020, %v1303_v7  }
  0x83   : > { %1031 = vset.pattern.permute.xlu0 %v1146_v20 }
  0x84   : > { %585 = vperm.xlu0 %1031, %v1305_v8  }
  0x86   : > { %1022 = vset.pattern.permute.xlu1 %v1147_v21 }
  0x87   : > { %453 = vperm.xlu1 %1022, %v1303_v7  }
  0x8b   : > { %465 = vperm.xlu1 %1022, %v1305_v8  }
  0x8f   : > { %1024 = vset.pattern.permute.xlu1 %v1143_v17 }
  0x90   : > { %489 = vperm.xlu1 %1024, %v1305_v8  }
  0x94   : > { %1025 = vset.pattern.permute.xlu1 %v1144_v18 }
  0x95   : > { %501 = vperm.xlu1 %1025, %v1303_v7  }
  0x99   : > { %1027 = vset.pattern.permute.xlu1 %v1149_v23 }
  0x9a   : > { %525 = vperm.xlu1 %1027, %v1303_v7  }
  0x9e   : > { %537 = vperm.xlu1 %1027, %v1305_v8  }
  0xa2   : > { %1029 = vset.pattern.permute.xlu1 %v1145_v19 }
  0xa3   : > { %561 = vperm.xlu1 %1029, %v1305_v8  }
  0xa7   : > { %1030 = vset.pattern.permute.xlu1 %v1146_v20 }
  0xa8   : > { %573 = vperm.xlu1 %1030, %v1303_v7  }
  0xc9   : > { %v238_v24 = vpop.permute.xlu1 %237  ;;  %v213_v30 = vpop.permute.xlu0 %212 }
  0xca   : > { %vm215_vm1 = vcmp.eq.bf16.partialorder %v213_v30, %v1374_v33  ;;  %vm240_vm3 = vcmp.eq.bf16.partialorder %v238_v24, %v1374_v33 }
  0xcb   : > { %v216_v37 = vsel %vm215_vm1, 65537, %v1133_v1  ;;  %v241_v43 = vsel %vm240_vm3, 65537, %v1133_v1 }
  0xcc   : > { %v217_v40 = vunpack.c.l.b16 %v216_v37  ;;  %v242_v47 = vunpack.c.l.b16 %v241_v43 }
  0xcd   : > { %v250_v25 = vpop.permute.xlu1 %249  ;;  %v226_v34 = vpop.permute.xlu0 %225 }
  0xce   : > { %vm228_vm2 = vcmp.eq.bf16.partialorder %v226_v34, %v1374_v33  ;;  %vm252_vm4 = vcmp.eq.bf16.partialorder %v250_v25, %v1374_v33  ;;  %vm218_vm7 = vcmp.ne.s32.totalorder %v217_v40, 0  ;;  %vm243_vm11 = vcmp.ne.s32.totalorder %v242_v47, 0 }
  0xcf   : > { %v229_v39 = vsel %vm228_vm2, 65537, %v1133_v1  ;;  %v253_v44 = vsel %vm252_vm4, 65537, %v1133_v1  ;;  %v822_v51 = vsel %vm218_vm7, 1.0, %v1134_v2  ;;  %v824_v62 = vsel %vm243_vm11, 1.0, %v1134_v2 }
  0xd0   : > { %v230_v41 = vunpack.c.l.b16 %v229_v39  ;;  %v254_v48 = vunpack.c.l.b16 %v253_v44  ;;  %v221_v58 = vpack.c.bf16 %v822_v51, %v822_v51  ;;  %v246_v8 = vpack.c.bf16 %v824_v62, %v824_v62 }
  0xd2   : > { %v274_v26 = vpop.permute.xlu1 %273  ;;  %v262_v38 = vpop.permute.xlu0 %261  ;;  %vm231_vm9 = vcmp.ne.s32.totalorder %v230_v41, 0  ;;  %vm255_vm13 = vcmp.ne.s32.totalorder %v254_v48, 0  ;;  %v222_v5 = vadd.bf16 0, %v221_v58 }
  0xd3   : > { %vm264_vm5 = vcmp.eq.bf16.partialorder %v262_v38, %v1374_v33  ;;  %vm276_vm6 = vcmp.eq.bf16.partialorder %v274_v26, %v1374_v33  ;;  %v823_v55 = vsel %vm231_vm9, 1.0, %v1134_v2  ;;  %v825_v3 = vsel %vm255_vm13, 1.0, %v1134_v2 }
  0xd4   : > { %v265_v46 = vsel %vm264_vm5, 65537, %v1133_v1  ;;  %v277_v49 = vsel %vm276_vm6, 65537, %v1133_v1  ;;  %v234_v61 = vpack.c.bf16 %v823_v55, %v823_v55  ;;  %v258_v13 = vpack.c.bf16 %v825_v3, %v825_v3 }
  0xd5   : > { %v266_v52 = vunpack.c.l.b16 %v265_v46  ;;  %v278_v56 = vunpack.c.l.b16 %v277_v49  ;;  %v247_v19 = vadd.bf16 %v246_v8, %v222_v5 }
  0xd6   : > { %v235_v9 = vadd.bf16 0, %v234_v61 }
  0xd7   : > { %v286_v29 = vpop.permute.xlu1 %285  ;;  %v298_v45 = vpop.permute.xlu0 %297  ;;  %vm267_vm15 = vcmp.ne.s32.totalorder %v266_v52, 0  ;;  %vm279_vm2 = vcmp.ne.s32.totalorder %v278_v56, 0 }
  0xd8   : > { %vm288_vm8 = vcmp.eq.bf16.partialorder %v286_v29, %v1374_v33  ;;  %vm300_vm12 = vcmp.eq.bf16.partialorder %v298_v45, %v1374_v33  ;;  %v826_v6 = vsel %vm267_vm15, 1.0, %v1134_v2  ;;  %v827_v14 = vsel %vm279_vm2, 1.0, %v1134_v2 }
  0xd9   : > { %v289_v53 = vsel %vm288_vm8, 65537, %v1133_v1  ;;  %v301_v63 = vsel %vm300_vm12, 65537, %v1133_v1  ;;  %v270_v16 = vpack.c.bf16 %v826_v6, %v826_v6  ;;  %v259_v23 = vadd.bf16 %v258_v13, %v235_v9 }
  0xda   : > { %v290_v59 = vunpack.c.l.b16 %v289_v53  ;;  %v302_v10 = vunpack.c.l.b16 %v301_v63  ;;  %v282_v24 = vpack.c.bf16 %v827_v14, %v827_v14 }
  0xdb   : > { %v271_v30 = vadd.bf16 %v270_v16, %v247_v19 }
  0xdc   : > { %v310_v32 = vpop.permute.xlu1 %309  ;;  %v334_v54 = vpop.permute.xlu0 %333  ;;  %vm291_vm3 = vcmp.ne.s32.totalorder %v290_v59, 0  ;;  %vm303_vm7 = vcmp.ne.s32.totalorder %v302_v10, 0 }
  0xdd   : > { %vm312_vm10 = vcmp.eq.bf16.partialorder %v310_v32, %v1374_v33  ;;  %vm336_vm14 = vcmp.eq.bf16.partialorder %v334_v54, %v1374_v33  ;;  %v828_v17 = vsel %vm291_vm3, 1.0, %v1134_v2  ;;  %v829_v31 = vsel %vm303_vm7, 1.0, %v1134_v2 }
  0xde   : > { %v313_v57 = vsel %vm312_vm10, 65537, %v1133_v1  ;;  %v337_v4 = vsel %vm336_vm14, 65537, %v1133_v1  ;;  %v294_v26 = vpack.c.bf16 %v828_v17, %v828_v17  ;;  %v306_v39 = vpack.c.bf16 %v829_v31, %v829_v31 }
  0xdf   : > { %v314_v0 = vunpack.c.l.b16 %v313_v57  ;;  %v338_v15 = vunpack.c.l.b16 %v337_v4 }
  0xe0   : > { %v322_v35 = vpop.permute.xlu1 %321  ;;  %v295_v38 = vadd.bf16 %v294_v26, %v271_v30 }
  0xe1   : > { %vm324_vm1 = vcmp.eq.bf16.partialorder %v322_v35, %v1374_v33  ;;  %v370_v7 = vpop.permute.xlu0 %369  ;;  %vm315_vm5 = vcmp.ne.s32.totalorder %v314_v0, 0  ;;  %vm339_vm8 = vcmp.ne.s32.totalorder %v338_v15, 0  ;;  %v283_v35 = vadd.bf16 %v282_v24, %v259_v23 }
  0xe2   : > { %v325_v11 = vsel %vm324_vm1, 65537, %v1133_v1  ;;  %vm372_vm6 = vcmp.eq.bf16.partialorder %v370_v7, %v1374_v33  ;;  %v830_v25 = vsel %vm315_vm5, 1.0, %v1134_v2 }
  0xe3   : > { %v326_v20 = vunpack.c.l.b16 %v325_v11  ;;  %v373_v28 = vsel %vm372_vm6, 65537, %v1133_v1  ;;  %v318_v32 = vpack.c.bf16 %v830_v25, %v830_v25  ;;  %v307_v53 = vadd.bf16 %v306_v39, %v283_v35 }
  0xe4   : > { %v374_v37 = vunpack.c.l.b16 %v373_v28 }
  0xe5   : > { %v1378_v36 = vpop.permute.xlu1 %345  ;;  %vm327_vm9 = vcmp.ne.s32.totalorder %v326_v20, 0  ;;  %v319_v43 = vadd.bf16 %v318_v32, %v295_v38 }
  0xe6   : > { %vm348_vm4 = vcmp.eq.bf16.partialorder %v1378_v36, %v1374_v33  ;;  %v406_v21 = vpop.permute.xlu0 %405  ;;  %v832_v36 = vsel %vm339_vm8, 1.0, %v1134_v2  ;;  %v831_v40 = vsel %vm327_vm9, 1.0, %v1134_v2  ;;  %vm375_vm2 = vcmp.ne.s32.totalorder %v374_v37, 0 }
  0xe7   : > { %v349_v18 = vsel %vm348_vm4, 65537, %v1133_v1  ;;  %vm408_vm13 = vcmp.eq.bf16.partialorder %v406_v21, %v1374_v33  ;;  %v342_v44 = vpack.c.bf16 %v832_v36, %v832_v36  ;;  %v330_v49 = vpack.c.bf16 %v831_v40, %v831_v40 }
  0xe8   : > { %v350_v27 = vunpack.c.l.b16 %v349_v18  ;;  %v409_v47 = vsel %vm408_vm13, 65537, %v1133_v1  ;;  %v835_v58 = vsel %vm375_vm2, 1.0, %v1134_v2 }
  0xe9   : > { %v410_v59 = vunpack.c.l.b16 %v409_v47  ;;  %v343_v61 = vadd.bf16 %v342_v44, %v319_v43  ;;  %v331_v63 = vadd.bf16 %v330_v49, %v307_v53  ;;  %v378_v4 = vpack.c.bf16 %v835_v58, %v835_v58 }
  0xea   : > { %v1385_v42 = vpop.permute.xlu1 %357  ;;  %vm351_vm12 = vcmp.ne.s32.totalorder %v350_v27, 0 }
  0xeb   : > { %vm360_vm10 = vcmp.eq.bf16.partialorder %v1385_v42, %v1374_v33  ;;  %v442_v34 = vpop.permute.xlu0 %441  ;;  %v833_v46 = vsel %vm351_vm12, 1.0, %v1134_v2  ;;  %vm1443_vm9 = vcmp.ne.s32.totalorder %v410_v59, 0 }
  0xec   : > { %v361_v41 = vsel %vm360_vm10, 65537, %v1133_v1  ;;  %vm444_vm15 = vcmp.eq.bf16.partialorder %v442_v34, %v1374_v33  ;;  %v354_v57 = vpack.c.bf16 %v833_v46, %v833_v46  ;;  %v838_v19 = vsel %vm1443_vm9, 1.0, %v1134_v2 }
  0xed   : > { %v445_v51 = vsel %vm444_vm15, 65537, %v1133_v1  ;;  %v414_v34 = vpack.c.bf16 %v838_v19, %v838_v19 }
  0xee   : > { %v446_v62 = vunpack.c.l.b16 %v445_v51  ;;  %v355_v5 = vadd.bf16 %v354_v57, %v331_v63 }
  0xef   : > { %v1394_v50 = vpop.permute.xlu1 %381 }
  0xf0   : > { %vm384_vm11 = vcmp.eq.bf16.partialorder %v1394_v50, %v1374_v33  ;;  %v362_v50 = vunpack.c.l.b16 %v361_v41  ;;  %v478_v52 = vpop.permute.xlu0 %477  ;;  %v379_v32 = vadd.bf16 %v378_v4, %v355_v5 }
  0xf1   : > { %v385_v45 = vsel %vm384_vm11, 65537, %v1133_v1  ;;  %vm480_vm8 = vcmp.eq.bf16.partialorder %v478_v52, %v1374_v33  ;;  %vm447_vm11 = vcmp.ne.s32.totalorder %v446_v62, 0 }
  0xf2   : > { %v386_v54 = vunpack.c.l.b16 %v385_v45  ;;  %vm363_vm4 = vcmp.ne.s32.totalorder %v362_v50, 0  ;;  %v481_v13 = vsel %vm480_vm8, 65537, %v1133_v1  ;;  %v841_v20 = vsel %vm447_vm11, 1.0, %v1134_v2 }
  0xf3   : > { %v1402_v60 = vpop.permute.xlu1 %393  ;;  %v834_v9 = vsel %vm363_vm4, 1.0, %v1134_v2  ;;  %v482_v26 = vunpack.c.l.b16 %v481_v13  ;;  %v450_v35 = vpack.c.bf16 %v841_v20, %v841_v20 }
  0xf4   : > { %vm396_vm14 = vcmp.eq.bf16.partialorder %v1402_v60, %v1374_v33  ;;  %vm387_vm6 = vcmp.ne.s32.totalorder %v386_v54, 0  ;;  %v366_v18 = vpack.c.bf16 %v834_v9, %v834_v9 }
  0xf5   : > { %v397_v48 = vsel %vm396_vm14, 65537, %v1133_v1  ;;  %v514_v3 = vpop.permute.xlu0 %513  ;;  %v836_v11 = vsel %vm387_vm6, 1.0, %v1134_v2  ;;  %vm1465_vm4 = vcmp.ne.s32.totalorder %v482_v26, 0 }
  0xf6   : > { %v398_v60 = vunpack.c.l.b16 %v397_v48  ;;  %vm516_vm14 = vcmp.eq.bf16.partialorder %v514_v3, %v1374_v33  ;;  %v390_v23 = vpack.c.bf16 %v836_v11, %v836_v11  ;;  %v367_v36 = vadd.bf16 %v366_v18, %v343_v61 }
  0xf7   : > { %v517_v30 = vsel %vm516_vm14, 65537, %v1133_v1 }
  0xf8   : > { %v418_v12 = vpop.permute.xlu1 %417  ;;  %vm399_vm10 = vcmp.ne.s32.totalorder %v398_v60, 0  ;;  %v518_v40 = vunpack.c.l.b16 %v517_v30  ;;  %v391_v41 = vadd.bf16 %v390_v23, %v367_v36 }
  0xf9   : > { %vm420_vm1 = vcmp.eq.bf16.partialorder %v418_v12, %v1374_v33  ;;  %v837_v15 = vsel %vm399_vm10, 1.0, %v1134_v2 }
  0xfa   : > { %v421_v55 = vsel %vm420_vm1, 65537, %v1133_v1  ;;  %v550_v14 = vpop.permute.xlu0 %549  ;;  %v402_v28 = vpack.c.bf16 %v837_v15, %v837_v15  ;;  %vm519_vm9 = vcmp.ne.s32.totalorder %v518_v40, 0  ;;  %v415_v54 = vadd.bf16 %v414_v34, %v391_v41 }
  0xfb   : > { %v422_v0 = vunpack.c.l.b16 %v421_v55  ;;  %vm552_vm8 = vcmp.eq.bf16.partialorder %v550_v14, %v1374_v33  ;;  %v844_v55 = vsel %vm1465_vm4, 1.0, %v1134_v2  ;;  %v847_v63 = vsel %vm519_vm9, 1.0, %v1134_v2 }
  0xfc   : > { %v553_v57 = vsel %vm552_vm8, 65537, %v1133_v1  ;;  %v486_v6 = vpack.c.bf16 %v844_v55, %v844_v55 }
  0xfd   : > { %v430_v29 = vpop.permute.xlu1 %429  ;;  %vm423_vm13 = vcmp.ne.s32.totalorder %v422_v0, 0  ;;  %v554_v4 = vunpack.c.l.b16 %v553_v57 }
  0xfe   : > { %vm432_vm3 = vcmp.eq.bf16.partialorder %v430_v29, %v1374_v33  ;;  %v839_v24 = vsel %vm423_vm13, 1.0, %v1134_v2 }
  0xff   : > { %v433_v7 = vsel %vm432_vm3, 65537, %v1133_v1  ;;  %v586_v31 = vpop.permute.xlu0 %585  ;;  %v426_v37 = vpack.c.bf16 %v839_v24, %v839_v24 }
 0x100   : > { %v434_v16 = vunpack.c.l.b16 %v433_v7 }
 0x102   : > { %v454_v42 = vpop.permute.xlu1 %453  ;;  %vm435_vm1 = vcmp.ne.s32.totalorder %v434_v16, 0 }
 0x103   : > { %vm456_vm7 = vcmp.eq.bf16.partialorder %v454_v42, %v1374_v33  ;;  %v403_v42 = vadd.bf16 %v402_v28, %v379_v32  ;;  %v840_v43 = vsel %vm435_vm1, 1.0, %v1134_v2  ;;  %vm555_vm1 = vcmp.ne.s32.totalorder %v554_v4, 0 }
 0x104   : > { %v457_v12 = vsel %vm456_vm7, 65537, %v1133_v1  ;;  %v438_v51 = vpack.c.bf16 %v840_v43, %v840_v43  ;;  %v850_v24 = vsel %vm555_vm1, 1.0, %v1134_v2 }
 0x105   : > { %v458_v25 = vunpack.c.l.b16 %v457_v12  ;;  %v427_v47 = vadd.bf16 %v426_v37, %v403_v42  ;;  %v558_v34 = vpack.c.bf16 %v850_v24, %v850_v24 }
 0x106   : > { %v466_v56 = vpop.permute.xlu1 %465  ;;  %v439_v3 = vadd.bf16 %v438_v51, %v415_v54 }
 0x107   : > { %vm468_vm5 = vcmp.eq.bf16.partialorder %v466_v56, %v1374_v33  ;;  %vm459_vm3 = vcmp.ne.s32.totalorder %v458_v25, 0  ;;  %v451_v61 = vadd.bf16 %v450_v35, %v427_v47 }
 0x108   : > { %v469_v10 = vsel %vm468_vm5, 65537, %v1133_v1  ;;  %vm588_vm5 = vcmp.eq.bf16.partialorder %v586_v31, %v1374_v33  ;;  %v842_v48 = vsel %vm459_vm3, 1.0, %v1134_v2 }
 0x109   : > { %v470_v21 = vunpack.c.l.b16 %v469_v10  ;;  %v589_v50 = vsel %vm588_vm5, 65537, %v1133_v1  ;;  %v462_v59 = vpack.c.bf16 %v842_v48, %v842_v48  ;;  %v522_v10 = vpack.c.bf16 %v847_v63, %v847_v63 }
 0x10a   : > { %v590_v60 = vunpack.c.l.b16 %v589_v50 }
 0x10b   : > { %v490_v8 = vpop.permute.xlu1 %489  ;;  %vm471_vm2 = vcmp.ne.s32.totalorder %v470_v21, 0  ;;  %v463_v9 = vadd.bf16 %v462_v59, %v439_v3 }
 0x10c   : > { %vm492_vm12 = vcmp.eq.bf16.partialorder %v490_v8, %v1374_v33  ;;  %v843_v45 = vsel %vm471_vm2, 1.0, %v1134_v2  ;;  %vm591_vm14 = vcmp.ne.s32.totalorder %v590_v60, 0 }
 0x10d   : > { %v493_v17 = vsel %vm492_vm12, 65537, %v1133_v1  ;;  %v474_v56 = vpack.c.bf16 %v843_v45, %v843_v45  ;;  %v487_v19 = vadd.bf16 %v486_v6, %v463_v9  ;;  %v853_v21 = vsel %vm591_vm14, 1.0, %v1134_v2 }
 0x10e   : > { %v494_v29 = vunpack.c.l.b16 %v493_v17  ;;  %v594_v30 = vpack.c.bf16 %v853_v21, %v853_v21 }
 0x10f   : > { %v475_v7 = vadd.bf16 %v474_v56, %v451_v61 }
 0x110   : > { %v502_v27 = vpop.permute.xlu1 %501  ;;  %vm495_vm6 = vcmp.ne.s32.totalorder %v494_v29, 0 }
 0x111   : > { %vm504_vm15 = vcmp.eq.bf16.partialorder %v502_v27, %v1374_v33  ;;  %v845_v52 = vsel %vm495_vm6, 1.0, %v1134_v2 }
 0x112   : > { %v505_v38 = vsel %vm504_vm15, 65537, %v1133_v1  ;;  %v498_v62 = vpack.c.bf16 %v845_v52, %v845_v52 }
 0x113   : > { %v506_v46 = vunpack.c.l.b16 %v505_v38 }
 0x114   : > { %v499_v12 = vadd.bf16 %v498_v62, %v475_v7 }
 0x115   : > { %v526_v44 = vpop.permute.xlu1 %525  ;;  %vm507_vm10 = vcmp.ne.s32.totalorder %v506_v46, 0 }
 0x116   : > { %vm528_vm7 = vcmp.eq.bf16.partialorder %v526_v44, %v1374_v33  ;;  %v846_v8 = vsel %vm507_vm10, 1.0, %v1134_v2  ;;  %v523_v23 = vadd.bf16 %v522_v10, %v499_v12 }
 0x117   : > { %v529_v49 = vsel %vm528_vm7, 65537, %v1133_v1  ;;  %v510_v15 = vpack.c.bf16 %v846_v8, %v846_v8 }
 0x118   : > { %v530_v53 = vunpack.c.l.b16 %v529_v49 }
 0x119   : > { %v538_v58 = vpop.permute.xlu1 %537  ;;  %v511_v26 = vadd.bf16 %v510_v15, %v487_v19 }
 0x11a   : > { %vm540_vm11 = vcmp.eq.bf16.partialorder %v538_v58, %v1374_v33  ;;  %vm531_vm12 = vcmp.ne.s32.totalorder %v530_v53, 0 }
 0x11b   : > { %v541_v0 = vsel %vm540_vm11, 65537, %v1133_v1  ;;  %v848_v13 = vsel %vm531_vm12, 1.0, %v1134_v2 }
 0x11c   : > { %v542_v5 = vunpack.c.l.b16 %v541_v0  ;;  %v534_v20 = vpack.c.bf16 %v848_v13, %v848_v13 }
 0x11e   : > { %vm543_vm13 = vcmp.ne.s32.totalorder %v542_v5, 0  ;;  %v562_v11 = vpop.permute.xlu1 %561  ;;  %v535_v32 = vadd.bf16 %v534_v20, %v511_v26 }
 0x11f   : > { %v849_v14 = vsel %vm543_vm13, 1.0, %v1134_v2  ;;  %vm564_vm15 = vcmp.eq.bf16.partialorder %v562_v11, %v1374_v33 }
 0x120   : > { %v565_v16 = vsel %vm564_vm15, 65537, %v1133_v1  ;;  %v546_v17 = vpack.c.bf16 %v849_v14, %v849_v14  ;;  %v559_v39 = vadd.bf16 %v558_v34, %v535_v32 }
 0x121   : > { %v566_v18 = vunpack.c.l.b16 %v565_v16 }
 0x122   : > { %v547_v28 = vadd.bf16 %v546_v17, %v523_v23 }
 0x123   : > { %vm567_vm2 = vcmp.ne.s32.totalorder %v566_v18, 0  ;;  %v574_v25 = vpop.permute.xlu1 %573 }
 0x124   : > { %v851_v27 = vsel %vm567_vm2, 1.0, %v1134_v2  ;;  %vm576_vm3 = vcmp.eq.bf16.partialorder %v574_v25, %v1374_v33 }
 0x125   : > { %v570_v29 = vpack.c.bf16 %v851_v27, %v851_v27  ;;  %v577_v31 = vsel %vm576_vm3, 65537, %v1133_v1 }
 0x126   : > { %v578_v35 = vunpack.c.l.b16 %v577_v31 }
 0x127   : > { %v571_v36 = vadd.bf16 %v570_v29, %v547_v28 }
 0x128   : > { %vm579_vm4 = vcmp.ne.s32.totalorder %v578_v35, 0 }
 0x129   : > { %v852_v37 = vsel %vm579_vm4, 1.0, %v1134_v2  ;;  %v595_v38 = vadd.bf16 %v594_v30, %v571_v36 }
 0x12a   : > { %v582_v40 = vpack.c.bf16 %v852_v37, %v852_v37 }
 0x12b   : > { %920 = vmatmul.mubr.bf16.vlgmr.msra.gmra.mxu1 %v595_v38 }
 0x12c   : > { %v583_v41 = vadd.bf16 %v582_v40, %v559_v39 }
 0x12e   : > { %v596_v42 = vmin.bf16 %v595_v38, %v583_v41 }
 0x130   : > { %900 = vmatmul.mubr.bf16.vlgmr.msra.gmra.mxu0 %v596_v42 }
 0x131   : > { %924 = vmatpush3.bf16.msra.mxu0 %v1148_v22  ;;  %939 = vmatprep.mubr.msk.bf16.mxu0 %vm1150_vm0, %v1134_v2  ;;  %vm721_vm0 = vcmask 7168  }
 0x132   : > { %925 = vmatprep.subr.bf16.mxu0 %v1134_v2 }
 0x135   : > { %926 = vmatpush3.bf16.msra.mxu0 %v1148_v22 }
 0x136   : > { %927 = vmatprep.subr.bf16.mxu0 %v1134_v2 }
 0x139   : > { %928 = vmatpush3.bf16.msra.mxu0 %v1148_v22 }
 0x13a   : > { %929 = vmatprep.subr.bf16.mxu0 %v1134_v2 }
 0x13d   : > { %930 = vmatpush3.bf16.msra.mxu0 %v1148_v22 }
 0x13e   : > { %931 = vmatprep.subr.bf16.mxu0 %v1134_v2 }
 0x141   : > { %932 = vmatpush3.bf16.msra.mxu0 %v1148_v22 }
 0x142   : > { %933 = vmatprep.subr.bf16.mxu0 %v1134_v2 }
 0x145   : > { %934 = vmatpush3.bf16.msra.mxu0 %v1148_v22 }
 0x146   : > { %935 = vmatprep.subr.bf16.mxu0 %v1134_v2 }
 0x149   : > { %936 = vmatpush3.bf16.msra.mxu0 %v1148_v22 }
 0x14a   : > { %937 = vmatprep.subr.bf16.mxu0 %v1134_v2 }
 0x14d   : > { %938 = vmatpush3.bf16.msra.mxu0 %v1148_v22 }
 0x150   : > { %940 = vmatmul.mubr.bf16.vlgmr.msra.gmra.mxu0 %v583_v41 }
 0x1eb   : > { %v671_v1 = vpop.f32.mrf.mxu1 }
 0x1ed   : > { %v921_v33 = vpop.f32.mrf.mxu1 }
 0x1ef   : > { %v674_v43 = vpop.f32.mrf.mxu1 }
 0x1f0   : > { %v631_v44 = vpop.f32.mrf.mxu0 }
 0x1f1   : > { %v922_v45 = vpop.f32.mrf.mxu1  ;;  %v717_v22 = vmul.f32 2.0, %v631_v44 }
 0x1f2   : > { %v901_v46 = vpop.f32.mrf.mxu0 }
 0x1f4   : > { %v634_v47 = vpop.f32.mrf.mxu0 }
 0x1f6   : > { %v902_v48 = vpop.f32.mrf.mxu0 }
 0x210   : > { %v711_v49 = vpop.f32.mrf.mxu0 }
 0x211   : > { %v712_v50 = vadd.f32 %v711_v49, %v671_v1 }
 0x212   : > { %v941_v51 = vpop.f32.mrf.mxu0 }
 0x213   : > { %v718_v52 = vmax.f32 %v712_v50, 1.0 }
 0x214   : > { %v714_v53 = vpop.f32.mrf.mxu0 }
 0x215   : > { %1032 = vrcp.f32 %v718_v52 }
 0x216   : > { %v942_v2 = vpop.f32.mrf.mxu0 }
 0x222   : > { %v1033_v54 = vpop.eup %1032 }
 0x223   : > { %v720_v55 = vmul.f32 %v1033_v54, %v717_v22 }
 0x225   : > { %722 = vst.msk [vmem:[%s195_s25] sm:$0xff] %vm721_vm0, %v720_v55 }
 0x226 PF: > { %p15_p8 = scmp.ge.s32.totalorder %s1188_s14, 4   ;;  %s1546_s9 = smov %s1120_s10 }
 0x227   : > { %s1547_s10 = smov %s1124_s11  ;;  %s1548_s11 = smov %s1198_s17 }
 0x228   : > { %s1549_s12 = smov %s1188_s14  ;;  %17 = sbr.rel (!%p15_p8) target bundleno = 5 (0x5), region = 81 }
 0x22d   :  { %742 = vsyncpa [#allocation3], 1 }
 0x22e   :  { %744 = vsyncpa [#allocation3 + $0x1], 1 }
 0x22f   :  { %745 = vsyncpa [#allocation5], 1 }
 0x230   :  { %747 = vsyncpa [#allocation5 + $0x1], 1 }

</bundles_post_ra>
